<compile_context>
chip_gen: v7x
topology: tpu7x:2x2x1
jax: 0.10.0
libtpu: 0.0.40
codegen_flags: <defaults>
</compile_context>

<pallas_src>
import functools

import jax
import jax.numpy as jnp
from jax import lax
from jax.experimental import pallas as pl
from jax.experimental.pallas import tpu as pltpu


# ----------------------------------------------------------------------------
# Kernel: one (batch, T-tile, head) step per grid point.
# ----------------------------------------------------------------------------
def mha_kernel(q_ref, k_ref, v_ref, bias_ref, wq_ref, wk_ref, wv_ref, wo_ref,
               o_ref, attn_ref, acc_ref, *, scale):
    h = pl.program_id(2)

    @pl.when(h == 0)
    def _():
        acc_ref[...] = jnp.zeros_like(acc_ref)

    q_in = q_ref[0]                      # (tq, d_model)
    k_in = k_ref[0]                      # (S, d_model)
    v_in = v_ref[0]                      # (S, d_model)
    in_dtype = q_in.dtype

    # Per-head projections: plain 2-D MXU matmuls with f32 accumulation.
    Qh = jnp.dot(q_in, wq_ref[0], preferred_element_type=jnp.float32)   # (tq, dkh)
    Kh = jnp.dot(k_in, wk_ref[0], preferred_element_type=jnp.float32)   # (S, dkh)
    Vh = jnp.dot(v_in, wv_ref[0], preferred_element_type=jnp.float32)   # (S, dvh)

    # Fold softmax scale into Q in f32, then drop operands to the input dtype
    # so QK^T / PV run at the bf16 MXU rate when the model is bf16.
    Qh = (Qh * jnp.float32(scale)).astype(in_dtype)
    Kh = Kh.astype(in_dtype)
    Vh = Vh.astype(in_dtype)

    # scores (tq, S) = Qh @ Kh^T  — single 2-D dot_general, no batch dims.
    scores = lax.dot_general(Qh, Kh, (((1,), (1,)), ((), ())),
                             preferred_element_type=jnp.float32)
    scores = scores + bias_ref[0]                    # additive (1, S) mask bias

    # Softmax over S in f32. Exact division: attention weights are a module
    # output and must sum to 1 (approx reciprocal is not accurate enough).
    scores = scores - jnp.max(scores, axis=-1, keepdims=True)
    e = jnp.exp(scores)
    a = e / jnp.sum(e, axis=-1, keepdims=True)

    # One contiguous lane-dense (tq, S) store per step.
    attn_ref[0, 0] = a.astype(attn_ref.dtype)

    # Per-head context and its slice of the fused output projection:
    #   y += (a @ V_h) @ wo_h   accumulated across heads in f32 scratch.
    ctx = jnp.dot(a.astype(in_dtype), Vh, preferred_element_type=jnp.float32)
    acc_ref[...] += jnp.dot(ctx.astype(wo_ref.dtype), wo_ref[0],
                            preferred_element_type=jnp.float32)

    @pl.when(h == pl.num_programs(2) - 1)
    def _():
        o_ref[0] = acc_ref[...].astype(o_ref.dtype)


# ----------------------------------------------------------------------------
# Wrapper
# ----------------------------------------------------------------------------
def _pick_tq(T, max_tq=256):
    if T <= max_tq:
        return T
    for tq in (256, 128, 64, 32, 16, 8):
        if tq <= max_tq and T % tq == 0:
            return tq
    return T


def multi_head_attention(query, key, value, mask, wq, wk, wv, wo, *, num_heads):
    """query: (B, T, d_model), key/value: (B, S, d_model), mask: (B, S) or None.

    Returns (y, attention_weights) matching the PyTorch module:
      y: (B, T, d_model), attention_weights: (B, num_heads, T, S).
    """
    B, T, d_model = query.shape
    S = key.shape[1]
    d_k = wq.shape[1]
    d_v = wv.shape[1]
    H = num_heads
    assert d_k % H == 0 and d_v % H == 0
    dkh = d_k // H
    dvh = d_v // H
    scale = float(dkh) ** (-0.5)

    # Head-major weight layouts, built once on the host:
    #   wq_h[h] == wq[:, h*dkh:(h+1)*dkh], wo_h[h] == wo[h*dvh:(h+1)*dvh, :].
    wq_h = wq.reshape(d_model, H, dkh).transpose(1, 0, 2)     # (H, d_model, dkh)
    wk_h = wk.reshape(d_model, H, dkh).transpose(1, 0, 2)     # (H, d_model, dkh)
    wv_h = wv.reshape(d_model, H, dvh).transpose(1, 0, 2)     # (H, d_model, dvh)
    wo_h = wo.reshape(H, dvh, d_model)                        # (H, dvh, d_model)

    # {0,1} padding mask -> additive bias (0 keep / -1e9 masked), once on host.
    if mask is None:
        bias = jnp.zeros((B, 1, S), jnp.float32)
    else:
        bias = ((mask.astype(jnp.float32) - 1.0) * 1e9).reshape(B, 1, S)

    tq = _pick_tq(T)
    num_t = T // tq

    kernel = functools.partial(mha_kernel, scale=scale)
    out, attn = pl.pallas_call(
        kernel,
        out_shape=(
            jax.ShapeDtypeStruct((B, T, d_model), query.dtype),
            jax.ShapeDtypeStruct((B, H, T, S), query.dtype),
        ),
        grid=(B, num_t, H),
        in_specs=[
            pl.BlockSpec((1, tq, d_model), lambda b, t, h: (b, t, 0)),
            pl.BlockSpec((1, S, d_model), lambda b, t, h: (b, 0, 0)),
            pl.BlockSpec((1, S, d_model), lambda b, t, h: (b, 0, 0)),
            pl.BlockSpec((1, 1, S), lambda b, t, h: (b, 0, 0)),
            pl.BlockSpec((1, d_model, dkh), lambda b, t, h: (h, 0, 0)),
            pl.BlockSpec((1, d_model, dkh), lambda b, t, h: (h, 0, 0)),
            pl.BlockSpec((1, d_model, dvh), lambda b, t, h: (h, 0, 0)),
            pl.BlockSpec((1, dvh, d_model), lambda b, t, h: (h, 0, 0)),
        ],
        out_specs=(
            pl.BlockSpec((1, tq, d_model), lambda b, t, h: (b, t, 0)),
            pl.BlockSpec((1, 1, tq, S), lambda b, t, h: (b, h, t, 0)),
        ),
        scratch_shapes=[pltpu.VMEM((tq, d_model), jnp.float32)],
        compiler_params=pltpu.CompilerParams(
            # batch and T-tile axes shard across TensorCores; head axis is the
            # output-projection reduction (accumulator) and stays "arbitrary".
            dimension_semantics=("parallel", "parallel", "arbitrary"),
            vmem_limit_bytes=64 * 1024 * 1024,
        ),
    )(query, key, value, bias, wq_h, wk_h, wv_h, wo_h)
    return out, attn


# ----------------------------------------------------------------------------
# Pure-JAX reference (mirrors the PyTorch forward exactly)
# ----------------------------------------------------------------------------
def mha_reference(query, key, value, mask, wq, wk, wv, wo, num_heads):
    B, T, d_model = query.shape
    S = key.shape[1]
    d_k = wq.shape[1]
    d_v = wv.shape[1]
    dkh = d_k // num_heads
    dvh = d_v // num_heads

    Q = query @ wq
    K = key @ wk
    V = value @ wv
    Q = Q.reshape(B, T, num_heads, dkh).transpose(0, 2, 1, 3)       # (B,H,T,dkh)
    K_t = K.reshape(B, S, num_heads, dkh).transpose(0, 2, 3, 1)     # (B,H,dkh,S)
    V = V.reshape(B, S, num_heads, dvh).transpose(0, 2, 1, 3)       # (B,H,S,dvh)

    energy = jnp.matmul(Q, K_t) * (dkh ** -0.5)                     # (B,H,T,S)
    if mask is not None:
        energy = jnp.where(mask[:, None, None, :] == 0, -jnp.inf, energy)
    a = jax.nn.softmax(energy, axis=3)
    ctx = jnp.matmul(a, V).transpose(0, 2, 1, 3).reshape(B, T, d_v)
    return ctx @ wo, a


# ----------------------------------------------------------------------------
# Demo
# ----------------------------------------------------------------------------
if __name__ == "__main__":
    B, T, S = 2, 8, 16
    d_model, num_heads = 32, 4
    d_k = d_v = d_model

    root = jax.random.PRNGKey(0)
    kq, kk, kv_, k1, k2, k3, k4 = jax.random.split(root, 7)

    query = jax.random.normal(kq, (B, T, d_model), jnp.float32)
    key = jax.random.normal(kk, (B, S, d_model), jnp.float32)
    value = jax.random.normal(kv_, (B, S, d_model), jnp.float32)

    # Padding mask (B, S): 1 = keep, 0 = masked out.
    mask = jnp.ones((B, S), jnp.float32).at[1, -3:].set(0.0)

    bound = 1.0 / (d_model ** 0.5)
    wq = jax.random.uniform(k1, (d_model, d_k), jnp.float32, -bound, bound)
    wk = jax.random.uniform(k2, (d_model, d_k), jnp.float32, -bound, bound)
    wv = jax.random.uniform(k3, (d_model, d_v), jnp.float32, -bound, bound)
    wo = jax.random.uniform(k4, (d_v, d_model), jnp.float32, -bound, bound)

    out, attn = multi_head_attention(query, key, value, mask, wq, wk, wv, wo,
                                     num_heads=num_heads)
    jax.block_until_ready((out, attn))

    ref_out, ref_attn = mha_reference(query, key, value, mask, wq, wk, wv, wo,
                                      num_heads)

    assert out.shape == (B, T, d_model)
    assert attn.shape == (B, num_heads, T, S)
    assert bool(jnp.all(jnp.isfinite(out)))
    assert bool(jnp.all(jnp.isfinite(attn)))
    assert bool(jnp.allclose(out, ref_out, atol=2e-2, rtol=2e-2))
    assert bool(jnp.allclose(attn, ref_attn, atol=2e-2, rtol=2e-2))
    # Attention rows sum to 1 (exact softmax division) and masked cols are zero.
    assert bool(jnp.allclose(attn.sum(-1), 1.0, atol=1e-3))
    assert bool(jnp.all(attn[1, :, :, -3:] == 0.0))

    print("KERNEL_OK")
</pallas_src>

<mosaic_0001>
module attributes {stable_mosaic.version = 11 : i64} {
  func.func @mha_kernel(%arg0: i32, %arg1: i32, %arg2: i32, %arg3: memref<1x8x32xf32, #tpu.memory_space<vmem>>, %arg4: memref<1x16x32xf32, #tpu.memory_space<vmem>>, %arg5: memref<1x16x32xf32, #tpu.memory_space<vmem>>, %arg6: memref<1x1x16xf32, #tpu.memory_space<vmem>>, %arg7: memref<1x32x8xf32, #tpu.memory_space<vmem>>, %arg8: memref<1x32x8xf32, #tpu.memory_space<vmem>>, %arg9: memref<1x32x8xf32, #tpu.memory_space<vmem>>, %arg10: memref<1x8x32xf32, #tpu.memory_space<vmem>>, %arg11: memref<1x8x32xf32, #tpu.memory_space<vmem>>, %arg12: memref<1x1x8x16xf32, #tpu.memory_space<vmem>>, %arg13: memref<8x32xf32, #tpu.memory_space<vmem>>) attributes {dimension_semantics = [#tpu.dimension_semantics<parallel>, #tpu.dimension_semantics<parallel>, #tpu.dimension_semantics<arbitrary>], iteration_bounds = array<i64: 2, 1, 4>, scalar_prefetch = 0 : i64, scratch_operands = 1 : i64, tpu.core_type = #tpu.core_type<tc>, window_params = [{transform_indices = @transform_0, window_bounds = array<i64: 1, 8, 32>}, {transform_indices = @transform_1, window_bounds = array<i64: 1, 16, 32>}, {transform_indices = @transform_2, window_bounds = array<i64: 1, 16, 32>}, {transform_indices = @transform_3, window_bounds = array<i64: 1, 1, 16>}, {transform_indices = @transform_4, window_bounds = array<i64: 1, 32, 8>}, {transform_indices = @transform_5, window_bounds = array<i64: 1, 32, 8>}, {transform_indices = @transform_6, window_bounds = array<i64: 1, 32, 8>}, {transform_indices = @transform_7, window_bounds = array<i64: 1, 8, 32>}, {transform_indices = @transform_8, window_bounds = array<i64: 1, 8, 32>}, {transform_indices = @transform_9, window_bounds = array<i64: 1, 1, 8, 16>}]} {
    %c0_i32 = arith.constant 0 : i32
    %0 = arith.cmpi eq, %arg2, %c0_i32 : i32
    %1 = arith.extui %0 : i1 to i32
    %c0_i32_0 = arith.constant 0 : i32
    %2 = arith.cmpi ne, %1, %c0_i32_0 : i32
    scf.if %2 {
      %cst_41 = arith.constant 0.000000e+00 : f32
      %47 = vector.broadcast %cst_41 : f32 to vector<8x32xf32>
      %c0_42 = arith.constant 0 : index
      %c0_43 = arith.constant 0 : index
      %48 = vector.load %arg13[%c0_42, %c0_43] : memref<8x32xf32, #tpu.memory_space<vmem>>, vector<8x32xf32>
      tpu.vector_store %arg13[%c0_42, %c0_43], %47 {strides = array<i32>} : memref<8x32xf32, #tpu.memory_space<vmem>>, vector<8x32xf32>,
    } else {
    }
    %c0 = arith.constant 0 : index
    %c0_1 = arith.constant 0 : index
    %c0_2 = arith.constant 0 : index
    %3 = vector.load %arg3[%c0, %c0_1, %c0_2] : memref<1x8x32xf32, #tpu.memory_space<vmem>>, vector<1x8x32xf32>
    %4 = vector.shape_cast %3 : vector<1x8x32xf32> to vector<8x32xf32>
    %c0_3 = arith.constant 0 : index
    %c0_4 = arith.constant 0 : index
    %c0_5 = arith.constant 0 : index
    %5 = vector.load %arg4[%c0_3, %c0_4, %c0_5] : memref<1x16x32xf32, #tpu.memory_space<vmem>>, vector<1x16x32xf32>
    %6 = vector.shape_cast %5 : vector<1x16x32xf32> to vector<16x32xf32>
    %c0_6 = arith.constant 0 : index
    %c0_7 = arith.constant 0 : index
    %c0_8 = arith.constant 0 : index
    %7 = vector.load %arg5[%c0_6, %c0_7, %c0_8] : memref<1x16x32xf32, #tpu.memory_space<vmem>>, vector<1x16x32xf32>
    %8 = vector.shape_cast %7 : vector<1x16x32xf32> to vector<16x32xf32>
    %c0_9 = arith.constant 0 : index
    %c0_10 = arith.constant 0 : index
    %c0_11 = arith.constant 0 : index
    %9 = vector.load %arg7[%c0_9, %c0_10, %c0_11] : memref<1x32x8xf32, #tpu.memory_space<vmem>>, vector<1x32x8xf32>
    %10 = vector.shape_cast %9 : vector<1x32x8xf32> to vector<32x8xf32>
    %cst = arith.constant dense<0.000000e+00> : vector<8x8xf32>
    %11 = tpu.matmul %4, %10, %cst {dimension_numbers = #tpu.dot_dimension_numbers<[1], [0], [0], [1], [0, 0, 1, 1], [], []>} : vector<8x32xf32>, vector<32x8xf32>, vector<8x8xf32> -> vector<8x8xf32>
    %c0_12 = arith.constant 0 : index
    %c0_13 = arith.constant 0 : index
    %c0_14 = arith.constant 0 : index
    %12 = vector.load %arg8[%c0_12, %c0_13, %c0_14] : memref<1x32x8xf32, #tpu.memory_space<vmem>>, vector<1x32x8xf32>
    %13 = vector.shape_cast %12 : vector<1x32x8xf32> to vector<32x8xf32>
    %cst_15 = arith.constant dense<0.000000e+00> : vector<16x8xf32>
    %14 = tpu.matmul %6, %13, %cst_15 {dimension_numbers = #tpu.dot_dimension_numbers<[1], [0], [0], [1], [0, 0, 1, 1], [], []>} : vector<16x32xf32>, vector<32x8xf32>, vector<16x8xf32> -> vector<16x8xf32>
    %c0_16 = arith.constant 0 : index
    %c0_17 = arith.constant 0 : index
    %c0_18 = arith.constant 0 : index
    %15 = vector.load %arg9[%c0_16, %c0_17, %c0_18] : memref<1x32x8xf32, #tpu.memory_space<vmem>>, vector<1x32x8xf32>
    %16 = vector.shape_cast %15 : vector<1x32x8xf32> to vector<32x8xf32>
    %cst_19 = arith.constant dense<0.000000e+00> : vector<16x8xf32>
    %17 = tpu.matmul %8, %16, %cst_19 {dimension_numbers = #tpu.dot_dimension_numbers<[1], [0], [0], [1], [0, 0, 1, 1], [], []>} : vector<16x32xf32>, vector<32x8xf32>, vector<16x8xf32> -> vector<16x8xf32>
    %cst_20 = arith.constant 0.353553385 : f32
    %18 = vector.broadcast %cst_20 : f32 to vector<8x8xf32>
    %19 = arith.mulf %11, %18 : vector<8x8xf32>
    %cst_21 = arith.constant dense<0.000000e+00> : vector<8x16xf32>
    %20 = tpu.matmul %19, %14, %cst_21 {dimension_numbers = #tpu.dot_dimension_numbers<[1], [1], [0], [0], [0, 0, 1, 0], [], []>} : vector<8x8xf32>, vector<16x8xf32>, vector<8x16xf32> -> vector<8x16xf32>
    %c0_22 = arith.constant 0 : index
    %c0_23 = arith.constant 0 : index
    %c0_24 = arith.constant 0 : index
    %21 = vector.load %arg6[%c0_22, %c0_23, %c0_24] : memref<1x1x16xf32, #tpu.memory_space<vmem>>, vector<1x1x16xf32>
    %22 = vector.shape_cast %21 : vector<1x1x16xf32> to vector<1x16xf32>
    %23 = vector.broadcast %22 : vector<1x16xf32> to vector<8x16xf32>
    %24 = arith.addf %20, %23 : vector<8x16xf32>
    %cst_25 = arith.constant dense<0xFF800000> : vector<8xf32>
    %25 = vector.multi_reduction <maximumf>, %24, %cst_25 [1] : vector<8x16xf32> to vector<8xf32>
    %26 = vector.shape_cast %25 : vector<8xf32> to vector<8x1xf32>
    %27 = vector.broadcast %26 : vector<8x1xf32> to vector<8x16xf32>
    %28 = arith.subf %24, %27 : vector<8x16xf32>
    %29 = math.exp %28 : vector<8x16xf32>
    %cst_26 = arith.constant dense<0.000000e+00> : vector<8xf32>
    %30 = vector.multi_reduction <add>, %29, %cst_26 [1] : vector<8x16xf32> to vector<8xf32>
    %31 = vector.shape_cast %30 : vector<8xf32> to vector<8x1xf32>
    %32 = vector.broadcast %31 : vector<8x1xf32> to vector<8x16xf32>
    %33 = arith.divf %29, %32 : vector<8x16xf32>
    %c0_27 = arith.constant 0 : index
    %c0_28 = arith.constant 0 : index
    %c0_29 = arith.constant 0 : index
    %c0_30 = arith.constant 0 : index
    %34 = vector.load %arg12[%c0_27, %c0_28, %c0_29, %c0_30] : memref<1x1x8x16xf32, #tpu.memory_space<vmem>>, vector<1x1x8x16xf32>
    %35 = vector.shape_cast %34 : vector<1x1x8x16xf32> to vector<8x16xf32>
    %36 = vector.shape_cast %33 : vector<8x16xf32> to vector<1x1x8x16xf32>
    tpu.vector_store %arg12[%c0_27, %c0_28, %c0_29, %c0_30], %36 {strides = array<i32>} : memref<1x1x8x16xf32, #tpu.memory_space<vmem>>, vector<1x1x8x16xf32>,
    %cst_31 = arith.constant dense<0.000000e+00> : vector<8x8xf32>
    %37 = tpu.matmul %33, %17, %cst_31 {dimension_numbers = #tpu.dot_dimension_numbers<[1], [0], [0], [1], [0, 0, 1, 1], [], []>} : vector<8x16xf32>, vector<16x8xf32>, vector<8x8xf32> -> vector<8x8xf32>
    %c0_32 = arith.constant 0 : index
    %c0_33 = arith.constant 0 : index
    %38 = vector.load %arg13[%c0_32, %c0_33] : memref<8x32xf32, #tpu.memory_space<vmem>>, vector<8x32xf32>
    %c0_34 = arith.constant 0 : index
    %c0_35 = arith.constant 0 : index
    %c0_36 = arith.constant 0 : index
    %39 = vector.load %arg10[%c0_34, %c0_35, %c0_36] : memref<1x8x32xf32, #tpu.memory_space<vmem>>, vector<1x8x32xf32>
    %40 = vector.shape_cast %39 : vector<1x8x32xf32> to vector<8x32xf32>
    %cst_37 = arith.constant dense<0.000000e+00> : vector<8x32xf32>
    %41 = tpu.matmul %37, %40, %cst_37 {dimension_numbers = #tpu.dot_dimension_numbers<[1], [0], [0], [1], [0, 0, 1, 1], [], []>} : vector<8x8xf32>, vector<8x32xf32>, vector<8x32xf32> -> vector<8x32xf32>
    %42 = arith.addf %38, %41 : vector<8x32xf32>
    %c0_38 = arith.constant 0 : index
    %c0_39 = arith.constant 0 : index
    %43 = vector.load %arg13[%c0_38, %c0_39] : memref<8x32xf32, #tpu.memory_space<vmem>>, vector<8x32xf32>
    tpu.vector_store %arg13[%c0_38, %c0_39], %42 {strides = array<i32>} : memref<8x32xf32, #tpu.memory_space<vmem>>, vector<8x32xf32>,
    %c3_i32 = arith.constant 3 : i32
    %44 = arith.cmpi eq, %arg2, %c3_i32 : i32
    %45 = arith.extui %44 : i1 to i32
    %c0_i32_40 = arith.constant 0 : i32
    %46 = arith.cmpi ne, %45, %c0_i32_40 : i32
    scf.if %46 {
      %c0_41 = arith.constant 0 : index
      %c0_42 = arith.constant 0 : index
      %47 = vector.load %arg13[%c0_41, %c0_42] : memref<8x32xf32, #tpu.memory_space<vmem>>, vector<8x32xf32>
      %c0_43 = arith.constant 0 : index
      %c0_44 = arith.constant 0 : index
      %c0_45 = arith.constant 0 : index
      %48 = vector.load %arg11[%c0_43, %c0_44, %c0_45] : memref<1x8x32xf32, #tpu.memory_space<vmem>>, vector<1x8x32xf32>
      %49 = vector.shape_cast %48 : vector<1x8x32xf32> to vector<8x32xf32>
      %50 = vector.shape_cast %47 : vector<8x32xf32> to vector<1x8x32xf32>
      tpu.vector_store %arg11[%c0_43, %c0_44, %c0_45], %50 {strides = array<i32>} : memref<1x8x32xf32, #tpu.memory_space<vmem>>, vector<1x8x32xf32>,
    } else {
    }
    return
  }
  func.func @transform_0(%arg0: i32, %arg1: i32, %arg2: i32) -> (i32, i32, i32) {
    %c0_i32 = arith.constant 0 : i32
    %c0_i32_0 = arith.constant 0 : i32
    return %arg0, %arg1, %c0_i32 : i32, i32, i32
  }
  func.func @transform_1(%arg0: i32, %arg1: i32, %arg2: i32) -> (i32, i32, i32) {
    %c0_i32 = arith.constant 0 : i32
    %c0_i32_0 = arith.constant 0 : i32
    %c0_i32_1 = arith.constant 0 : i32
    return %arg0, %c0_i32, %c0_i32_0 : i32, i32, i32
  }
  func.func @transform_2(%arg0: i32, %arg1: i32, %arg2: i32) -> (i32, i32, i32) {
    %c0_i32 = arith.constant 0 : i32
    %c0_i32_0 = arith.constant 0 : i32
    %c0_i32_1 = arith.constant 0 : i32
    return %arg0, %c0_i32, %c0_i32_0 : i32, i32, i32
  }
  func.func @transform_3(%arg0: i32, %arg1: i32, %arg2: i32) -> (i32, i32, i32) {
    %c0_i32 = arith.constant 0 : i32
    %c0_i32_0 = arith.constant 0 : i32
    %c0_i32_1 = arith.constant 0 : i32
    return %arg0, %c0_i32, %c0_i32_0 : i32, i32, i32
  }
  func.func @transform_4(%arg0: i32, %arg1: i32, %arg2: i32) -> (i32, i32, i32) {
    %c0_i32 = arith.constant 0 : i32
    %c0_i32_0 = arith.constant 0 : i32
    %c0_i32_1 = arith.constant 0 : i32
    return %arg2, %c0_i32, %c0_i32_0 : i32, i32, i32
  }
  func.func @transform_5(%arg0: i32, %arg1: i32, %arg2: i32) -> (i32, i32, i32) {
    %c0_i32 = arith.constant 0 : i32
    %c0_i32_0 = arith.constant 0 : i32
    %c0_i32_1 = arith.constant 0 : i32
    return %arg2, %c0_i32, %c0_i32_0 : i32, i32, i32
  }
  func.func @transform_6(%arg0: i32, %arg1: i32, %arg2: i32) -> (i32, i32, i32) {
    %c0_i32 = arith.constant 0 : i32
    %c0_i32_0 = arith.constant 0 : i32
    %c0_i32_1 = arith.constant 0 : i32
    return %arg2, %c0_i32, %c0_i32_0 : i32, i32, i32
  }
  func.func @transform_7(%arg0: i32, %arg1: i32, %arg2: i32) -> (i32, i32, i32) {
    %c0_i32 = arith.constant 0 : i32
    %c0_i32_0 = arith.constant 0 : i32
    %c0_i32_1 = arith.constant 0 : i32
    return %arg2, %c0_i32, %c0_i32_0 : i32, i32, i32
  }
  func.func @transform_8(%arg0: i32, %arg1: i32, %arg2: i32) -> (i32, i32, i32) {
    %c0_i32 = arith.constant 0 : i32
    %c0_i32_0 = arith.constant 0 : i32
    return %arg0, %arg1, %c0_i32 : i32, i32, i32
  }
  func.func @transform_9(%arg0: i32, %arg1: i32, %arg2: i32) -> (i32, i32, i32, i32) {
    %c0_i32 = arith.constant 0 : i32
    %c0_i32_0 = arith.constant 0 : i32
    return %arg0, %arg2, %arg1, %c0_i32 : i32, i32, i32, i32
  }
}

</mosaic_0001>

<bundles_post_ra>
// kernel: tpu_custom_call.1
= control target key start
LH: loop header
LB: loop body
LE: loop exit
PB: predicated region body
PF: predicated region fallthrough
CT: control target
= control target key end

     0   :  { %s2994_s0 = inlined_call_operand.hbm [shape: f32[2,8,32], index: 0, kind: input, shape index: {}]   ;;  %s2995_s1 = inlined_call_operand.hbm [shape: f32[2,16,32], index: 1, kind: input, shape index: {}]   ;;  %s2996_s2 = inlined_call_operand.hbm [shape: f32[2,16,32], index: 2, kind: input, shape index: {}]   ;;  %s2997_s3 = inlined_call_operand.hbm [shape: f32[2,1,16], index: 3, kind: input, shape index: {}]   ;;  %s2998_s4 = inlined_call_operand.hbm [shape: f32[4,32,8], index: 4, kind: input, shape index: {}]   ;;  %s2999_s5 = inlined_call_operand.hbm [shape: f32[4,32,8], index: 5, kind: input, shape index: {}]   ;;  %s3000_s6 = inlined_call_operand.hbm [shape: f32[4,32,8], index: 6, kind: input, shape index: {}]   ;;  %s3001_s7 = inlined_call_operand.hbm [shape: f32[4,8,32], index: 7, kind: input, shape index: {}]   ;;  %s3002_s8 = inlined_call_operand.hbm [shape: f32[2,8,32], index: 8, kind: output, shape index: {0}]   ;;  %s3003_s9 = inlined_call_operand.hbm [shape: f32[2,4,8,16], index: 9, kind: output, shape index: {1}]  }
   0x1   :  { %3059 = sst [smem:[#allocation52_spill]] %s2994_s0 }
   0x2   :  { %3060 = sst [smem:[#allocation53_spill]] %s2995_s1 }
   0x3   :  { %3061 = sst [smem:[#allocation54_spill]] %s2997_s3 }
   0x4   :  { %3062 = sst [smem:[#allocation55_spill]] %s2998_s4 }
   0x5   :  { %3063 = sst [smem:[#allocation56_spill]] %s2999_s5 }
   0x6   :  { %3064 = sst [smem:[#allocation57_spill]] %s3000_s6 }
   0x7   :  { %3065 = sst [smem:[#allocation58_spill]] %s3001_s7 }
   0x8   :  { %3066 = sst [smem:[#allocation59_spill]] %s3002_s8 }
   0x9   :  { %3067 = sst [smem:[#allocation60_spill]] %s3003_s9 }
   0xa   :  { %15 = vsyncpa [#allocation4], 0 }
   0xb   :  { %17 = vsyncpa [#allocation4 + $0x1], 0 }
   0xc   :  { %18 = vsyncpa [#allocation7], 0 }
   0xd   :  { %20 = vsyncpa [#allocation7 + $0x1], 0 }
   0xe   :  { %21 = vsyncpa [#allocation10], 0 }
   0xf   :  { %23 = vsyncpa [#allocation10 + $0x1], 0 }
  0x10   :  { %24 = vsyncpa [#allocation13], 0 }
  0x11   :  { %26 = vsyncpa [#allocation13 + $0x1], 0 }
  0x12   :  { %27 = vsyncpa [#allocation16], 0 }
  0x13   :  { %29 = vsyncpa [#allocation16 + $0x1], 0 }
  0x14   :  { %30 = vsyncpa [#allocation5], 0 }
  0x15   :  { %32 = vsyncpa [#allocation5 + $0x1], 0 }
  0x16   :  { %33 = vsyncpa [#allocation19], 0 }
  0x17   :  { %35 = vsyncpa [#allocation19 + $0x1], 0  ;;  %s2318_s30 = smov 0   ;;  %s2320_s10 = smov 0  }
  0x18   :  { %s2322_s11 = smov 0   ;;  %s2324_s12 = smov 0  }
  0x19   :  { %s2326_s13 = smov 0   ;;  %s2328_s14 = smov 0  }
  0x1a   :  { %s2330_s15 = smov 0   ;;  %s2332_s16 = smov 0  }
  0x1b   :  { %s2334_s17 = smov 0   ;;  %s2336_s18 = smov 0  }
  0x1c   :  { %s2338_s19 = smov 0   ;;  %s2340_s20 = smov 0  }
  0x1d   :  { %s2342_s21 = smov 0   ;;  %s2344_s22 = smov 0  }
  0x1e LB: > { %3068 = sst [smem:[#allocation28_spill]] %s2198_s30  ;;  %s2389_s23 = sadd.s32 4294967295, %s2250_s22   ;;  %s2250_s22 = sphi %s2344_s22, %s41_s22   ;;  %s2246_s21 = sphi %s2342_s21, %s3179_s21   ;;  %s2242_s20 = sphi %s2340_s20, %s3178_s20   ;;  %s2238_s19 = sphi %s2338_s19, %s3177_s19   ;;  %s2234_s18 = sphi %s2336_s18, %s3176_s18   ;;  %s2230_s17 = sphi %s2334_s17, %s3171_s17   ;;  %s2226_s16 = sphi %s2332_s16, %s3170_s16   ;;  %s2222_s15 = sphi %s2330_s15, %s3175_s15   ;;  %s2218_s14 = sphi %s2328_s14, %s3168_s14   ;;  %s2214_s13 = sphi %s2326_s13, %s3167_s13   ;;  %s2210_s12 = sphi %s2324_s12, %s3166_s12   ;;  %s2206_s11 = sphi %s2322_s11, %s3165_s11   ;;  %s2202_s10 = sphi %s2320_s10, %s3164_s10   ;;  %s2198_s30 = sphi %s2318_s30, %s3163_s30  }
  0x1f   : > { %3069 = sst [smem:[#allocation29_spill]] %s2202_s10  ;;  %s1472_s24 = sadd.s32 4294967294, %s2250_s22  }
  0x20   : > { %3070 = sst [smem:[#allocation30_spill]] %s2206_s11  ;;  %p76_p0 = scmp.ne.s32.totalorder %s2230_s17, %s2226_s16 }
  0x21   : > { %3071 = sst [smem:[#allocation31_spill]] %s2214_s13  ;;  %p3021_p1 = scmp.eq.s32.totalorder %s2250_s22, 0 }
  0x22   : > { %3072 = sst [smem:[#allocation32_spill]] %s2218_s14  ;;  %p82_p2 = scmp.ne.s32.totalorder %s2226_s16, %s2222_s15 }
  0x23   : > { %3073 = sst [smem:[#allocation33_spill]] %s2222_s15  ;;  %p3020_p3 = scmp.eq.s32.totalorder %s2389_s23, 0 }
  0x24   : > { %3074 = sst [smem:[#allocation34_spill]] %s2226_s16  ;;  %p3019_p4 = scmp.eq.s32.totalorder %s2389_s23, 7 }
  0x25   : > { %3075 = sst [smem:[#allocation35_spill]] %s2230_s17  ;;  %p78_p5 = por %p3021_p1, %p76_p0 }
  0x26   : > { %3076 = sst [smem:[#allocation36_spill]] %s2234_s18  ;;  %p296_p6 = scmp.eq.s32.totalorder %s1472_s24, 7 }
  0x27   : > { %3077 = sst [smem:[#allocation37_spill]] %s2238_s19  ;;  %p2404_p7 = por %p3020_p3, %p82_p2 }
  0x28   : > { %3078 = sst [smem:[#allocation38_spill]] %s2250_s22  ;;  %p2410_p8 = por %p3019_p4, %p76_p0 }
  0x29   : > { %3079 = sst [smem:[#allocation39_spill]] %s2389_s23  ;;  %p2414_p9 = por %p296_p6, %p82_p2 }
  0x2a   : > { %s3080_s26 = scalar_select %p2404_p7, 1, 0 }
  0x2b   : > { %s3082_s27 = scalar_select %p2410_p8, 1, 0 }
  0x2c   : > { %3081 = sst [smem:[#allocation40_spill]] %s3080_s26  ;;  %p325_p10 = scmp.ne.s32.totalorder %s2202_s10, %s2198_s30 }
  0x2d   : > { %3083 = sst [smem:[#allocation41_spill]] %s3082_s27  ;;  %p3018_p11 = scmp.lt.s32.totalorder %s2250_s22, 8 }
  0x2e   : > { %s3084_s28 = scalar_select %p2414_p9, 1, 0 }
  0x2f   : > { %p2421_p12 = por %p325_p10, %p296_p6  ;;  %s2426_s24 = sand.u32 1, %s2230_s17  }
  0x30   : > { %3085 = sst [smem:[#allocation42_spill]] %s3084_s28  ;;  %p2430_p13 = pnand %p3018_p11, %p78_p5 }
  0x31   : > { %s3086_s29 = scalar_select %p2421_p12, 1, 0 }
  0x32   : > { %s3088_s25 = scalar_select %p2430_p13, 1, 0 }
  0x33   : > { %3087 = sst [smem:[#allocation43_spill]] %s3086_s29  ;;  %s2435_s15 = sand.u32 1, %s2250_s22  }
  0x34   : > { %s3016_s28 = sshll.u32 %s2426_s24, 4  ;;  %s3017_s30 = sshll.u32 %s2246_s21, 8 }
  0x35   : > { %s369_s9 = scalar_lea.vmem [#allocation6], %s3016_s28  ;;  %s3089_s1 = sld [smem:[#allocation53_spill]] }
  0x36   : > { %s376_s8 = sshll.u32 %s369_s9, 4  ;;  %p2455_p2 = pneg %p2430_p13  ;;  %s2448_s8 = int_to_ptr.vmem [resolvable:$true] %s376_s8 }
  0x38   : > { %s3090_s16 = scalar_select %p2455_p2, 1, 0 }
  0x3b   : > { %s2446_s19 = scalar_lea.hbm %s3089_s1, %s3017_s30  ;;  %s1817_s29 = scalar_lea.hbm %s3089_s1, 512 }
  0x3c   : > { %s1812_s26 = scalar_lea.hbm %s2446_s19, 256  ;;  %p1818_p10 = scmp.lt.u32.totalorder %s2446_s19, %s3089_s1 }
  0x3d   : > { %p1813_p0 = scmp.ne.s32.totalorder %s2446_s19, %s1812_s26  ;;  %p1819_p11 = scmp.lt.u32.totalorder %s1817_s29, %s1812_s26 }
  0x3e   : > { %p1821_p3 = scmp.lt.u32.totalorder %s1812_s26, %s2446_s19 }
  0x3f   : > { %p1815_p5 = pnand %p2455_p2, %p1813_p0  ;;  %p1820_p4 = por %p1819_p11, %p1818_p10 }
  0x41   : > { %p1816_p6 = pneg %p1815_p5  ;;  %p1822_p1 = por %p1821_p3, %p1820_p4 }
  0x43   : > { %p1823_p12 = pnand %p1822_p1, %p1816_p6 }
  0x45   : > { %1826 = shalt.err (!%p1823_p12)
}
  0x46   : > { %s1827_s18 = scalar_lea.vmem %s2448_s8, 256  ;;  %s2252_s9 = smov [#allocation6]  }
  0x47   : > { %p1828_p0 = scmp.ne.s32.totalorder %s2448_s8, %s1827_s18  ;;  %s1832_s27 = sshll.u32 %s2252_s9, 4  ;;  %s1833_s27 = int_to_ptr.vmem [resolvable:$false] %s1832_s27 }
  0x48   : > { %s1834_s30 = scalar_lea.vmem %s1833_s27, 512  ;;  %p1835_p8 = scmp.lt.s32.totalorder %s2448_s8, %s1833_s27 }
  0x49   : > { %p1830_p5 = pnand %p1828_p0, %p2455_p2  ;;  %p1836_p7 = scmp.lt.s32.totalorder %s1834_s30, %s1827_s18 }
  0x4b   : > { %p1831_p9 = pneg %p1830_p5  ;;  %p1837_p11 = por %p1836_p7, %p1835_p8 }
  0x4d   : > { %p1838_p10 = pnand %p1837_p11, %p1831_p9 }
  0x4f   : > { %1841 = shalt.err (!%p1838_p10)
}
  0x50   : > { %s3028_s26 = smov 128   ;;  %s3030_s28 = smov 8  }
  0x51   : > { %s3091_s18 = scalar_lea.sflag [#allocation7], %s2435_s15  ;;  %s3092_s29 = sshll.u32 %s2246_s21, 8 }
  0x52   : > { %1662 = dma.hbm_to_vmem [thread:$0]  (!%p2430_p13), %s2446_s19, 256, %s2448_s8, %s3091_s18, %s3028_s26, %s3028_s26, %s3030_s28  }
  0x53   : > { %s2488_s30 = scalar_lea.hbm %s2996_s2, %s3092_s29  ;;  %s3093_s1 = sshll.u32 %s2426_s24, 4 }
  0x54   : > { %s390_s7 = scalar_lea.vmem [#allocation8], %s3093_s1  ;;  %p1495_p1 = scmp.ge.s32.totalorder %s2250_s22, 1 }
  0x55   : > { %s397_s6 = sshll.u32 %s390_s7, 4  ;;  %p503_p3 = scmp.lt.s32.totalorder %s2250_s22, 9  ;;  %s2493_s6 = int_to_ptr.vmem [resolvable:$true] %s397_s6 }
  0x56   : > { %s1483_s0 = sshll.u32 %s2246_s21, 4  ;;  %s3096_s3 = sld [smem:[#allocation54_spill]] }
  0x57   : > { %p2496_p4 = pnand %p1495_p1, %p503_p3  ;;  %s410_s1 = scalar_lea.vmem [#allocation9], %s2426_s24 }
  0x58   : > { %s417_s7 = sshll.u32 %s410_s1, 4  ;;  %s418_s7 = int_to_ptr.vmem [resolvable:$true] %s417_s7 }
  0x59   : > { %s3094_s4 = scalar_select %p2496_p4, 1, 0 }
  0x5b   : > { %3095 = sst [smem:[#allocation44_spill]] %s3094_s4 }
  0x5c   : > { %s2504_s18 = scalar_lea.hbm %s3096_s3, %s1483_s0  ;;  %s1847_s28 = scalar_lea.hbm %s3096_s3, 32 }
  0x5d   : > { %s1842_s9 = scalar_lea.hbm %s2504_s18, 16  ;;  %p1848_p12 = scmp.lt.u32.totalorder %s2504_s18, %s3096_s3 }
  0x5e   : > { %p1843_p7 = scmp.ne.s32.totalorder %s2504_s18, %s1842_s9  ;;  %p1849_p6 = scmp.lt.u32.totalorder %s1847_s28, %s1842_s9 }
  0x5f   : > { %p1851_p5 = scmp.lt.u32.totalorder %s1842_s9, %s2504_s18 }
  0x60   : > { %p1845_p8 = pnand %p1843_p7, %p2455_p2  ;;  %p1850_p0 = por %p1849_p6, %p1848_p12 }
  0x62   : > { %p1846_p9 = pneg %p1845_p8  ;;  %p1852_p11 = por %p1851_p5, %p1850_p0 }
  0x64   : > { %p1853_p10 = pnand %p1852_p11, %p1846_p9 }
  0x66   : > { %1856 = shalt.err (!%p1853_p10)
}
  0x67   : > { %s1857_s19 = scalar_lea.vmem %s418_s7, 16  ;;  %s2255_s1 = smov [#allocation9]  }
  0x68   : > { %p1858_p1 = scmp.ne.s32.totalorder %s418_s7, %s1857_s19  ;;  %s1862_s29 = sshll.u32 %s2255_s1, 4  ;;  %s1863_s29 = int_to_ptr.vmem [resolvable:$false] %s1862_s29 }
  0x69   : > { %s1864_s26 = scalar_lea.vmem %s1863_s29, 32  ;;  %p1865_p8 = scmp.lt.s32.totalorder %s418_s7, %s1863_s29 }
  0x6a   : > { %p1860_p3 = pnand %p1858_p1, %p2455_p2  ;;  %p1866_p4 = scmp.lt.s32.totalorder %s1864_s26, %s1857_s19 }
  0x6c   : > { %p1861_p7 = pneg %p1860_p3  ;;  %p1867_p13 = por %p1866_p4, %p1865_p8 }
  0x6e   : > { %p1868_p6 = pnand %p1867_p13, %p1861_p7 }
  0x70   : > { %1871 = shalt.err (!%p1868_p6)
}
  0x71   : > { %p3097_p12 = scmp.ne.s32.totalorder %s3088_s25, 0  ;;  %s3098_s28 = scalar_lea.sflag [#allocation10], %s2435_s15 }
  0x72   : > { %s53_s29 = sadd.s32 1, %s2242_s20  ;;  %s60_s9 = sadd.s32 1, %s2246_s21 }
  0x73   : > { %1668 = dma.hbm_to_vmem [thread:$0]  (!%p3097_p12), %s2504_s18, 16, %s418_s7, %s3098_s28  }
  0x74   : > { %p54_p13 = scmp.ge.s32.totalorder %s53_s29, 4  ;;  %s173_s27 = sadd.s32 1, %s2218_s14 }
  0x75   : > { %p180_p4 = scmp.ne.s32.totalorder %s2218_s14, %s2214_s13  ;;  %p3100_p9 = scmp.eq.s32.totalorder %s2250_s22, 0 }
  0x76   : > { %s3181_s29 = smov (%p54_p13, %s53_s29), 0  ;;  %s3183_s9 = smov (!%p54_p13, %s60_s9), %s2246_s21 }
  0x77   : > { %3099 = sst [smem:[#allocation45_spill]] %s3181_s29  ;;  %s170_s8 = ssub.s32 %s2242_s20, %s3181_s29 }
  0x78   : > { %p2539_p0 = por %p180_p4, %p3100_p9  ;;  %p62_p5 = scmp.ge.s32.totalorder %s3183_s9, 2 }
  0x79   : > { %p171_p11 = scmp.eq.s32.totalorder %s170_s8, 0  ;;  %p186_p10 = scmp.ne.s32.totalorder %s2214_s13, %s2210_s12 }
  0x7a   : > { %s309_s7 = sadd.s32 1, %s2206_s11  ;;  %s3185_s9 = smov (%p62_p5, %s3183_s9), 0 }
  0x7b   : > { %3102 = sst [smem:[#allocation46_spill]] %s3185_s9  ;;  %s64_s19 = ssub.s32 %s2246_s21, %s3185_s9 }
  0x7c   : > { %s2549_s0 = scalar_select %p171_p11, %s2218_s14, %s173_s27  }
  0x7d   : > { %p3104_p1 = scmp.eq.s32.totalorder %s2389_s23, 0  ;;  %p67_p7 = scmp.eq.s32.totalorder %s64_s19, 0 }
  0x7e   : > { %3103 = sst [smem:[#allocation47_spill]] %s2549_s0  ;;  %s304_s26 = sor.u32 %s170_s8, %s64_s19 }
  0x7f   : > { %p2555_p3 = por %p186_p10, %p3104_p1  ;;  %p307_p8 = scmp.eq.s32.totalorder %s304_s26, 0 }
  0x80   : > { %p319_p6 = scmp.ne.s32.totalorder %s2206_s11, %s2202_s10  ;;  %s3107_s12 = sadd.s32 1, %s2230_s17 }
  0x81   : > { %s3105_s1 = scalar_select %p2555_p3, 1, 0 }
  0x82   : > { %s2564_s28 = scalar_select %p67_p7, %s2230_s17, %s3107_s12  }
  0x83   : > { %3106 = sst [smem:[#allocation48_spill]] %s3105_s1  ;;  %p3110_p13 = scmp.eq.s32.totalorder %s2389_s23, 7 }
  0x84   : > { %3108 = sst [smem:[#allocation49_spill]] %s2564_s28  ;;  %s2576_s9 = sand.u32 1, %s2218_s14  }
  0x85   : > { %s2567_s3 = scalar_select %p307_p8, %s2206_s11, %s309_s7  }
  0x86   : > { %p2571_p4 = por %p319_p6, %p3110_p13  ;;  %s2579_s29 = sshll.u32 %s2576_s9, 5 }
  0x87   : > { %3109 = sst [smem:[#allocation50_spill]] %s2567_s3  ;;  %s2582_s0 = sshll.u32 %s2242_s20, 9 }
  0x88   : > { %s3111_s27 = scalar_select %p2571_p4, 1, 0 }
  0x89   : > { %p3113_p9 = scmp.lt.s32.totalorder %s2250_s22, 8  ;;  %s3115_s5 = sld [smem:[#allocation56_spill]] }
  0x8a   : > { %3112 = sst [smem:[#allocation51_spill]] %s3111_s27  ;;  %s449_s12 = scalar_lea.vmem [#allocation12], %s2579_s29 }
  0x8b   : > { %p2588_p5 = pnand %p3113_p9, %p2539_p0  ;;  %s456_s28 = sshll.u32 %s449_s12, 4  ;;  %s2599_s28 = int_to_ptr.vmem [resolvable:$true] %s456_s28 }
  0x8d   : > { %s3114_s8 = scalar_select %p2588_p5, 1, 0 }
  0x8e   : > { %p2606_p11 = pneg %p2588_p5 }
  0x8f   : > { %s2596_s26 = scalar_lea.hbm %s3115_s5, %s2582_s0  ;;  %s1877_s3 = scalar_lea.hbm %s3115_s5, 2048 }
  0x90   : > { %s1872_s17 = scalar_lea.hbm %s2596_s26, 512  ;;  %p1878_p7 = scmp.lt.u32.totalorder %s2596_s26, %s3115_s5 }
  0x91   : > { %p1873_p0 = scmp.ne.s32.totalorder %s2596_s26, %s1872_s17  ;;  %p1879_p8 = scmp.lt.u32.totalorder %s1877_s3, %s1872_s17 }
  0x92   : > { %s3116_s14 = scalar_select %p2606_p11, 1, 0 }
  0x93   : > { %p1875_p10 = pnand %p2606_p11, %p1873_p0  ;;  %p1880_p6 = por %p1879_p8, %p1878_p7 }
  0x94   : > { %p1881_p13 = scmp.lt.u32.totalorder %s1872_s17, %s2596_s26 }
  0x95   : > { %p1876_p1 = pneg %p1875_p10 }
  0x96   : > { %p1882_p9 = por %p1881_p13, %p1880_p6 }
  0x98   : > { %p1883_p4 = pnand %p1882_p9, %p1876_p1 }
  0x9a   : > { %1886 = shalt.err (!%p1883_p4)
}
  0x9b   : > { %s1887_s18 = scalar_lea.vmem %s2599_s28, 512  ;;  %s2256_s7 = smov [#allocation12]  }
  0x9c   : > { %p1888_p0 = scmp.ne.s32.totalorder %s2599_s28, %s1887_s18  ;;  %s1892_s19 = sshll.u32 %s2256_s7, 4  ;;  %s1893_s19 = int_to_ptr.vmem [resolvable:$false] %s1892_s19 }
  0x9d   : > { %s1894_s11 = scalar_lea.vmem %s1893_s19, 1024  ;;  %p1895_p12 = scmp.lt.s32.totalorder %s2599_s28, %s1893_s19 }
  0x9e   : > { %p1890_p10 = pnand %p1888_p0, %p2606_p11  ;;  %p1896_p2 = scmp.lt.s32.totalorder %s1894_s11, %s1887_s18 }
  0xa0   : > { %p1891_p3 = pneg %p1890_p10  ;;  %p1897_p7 = por %p1896_p2, %p1895_p12 }
  0xa2   : > { %p1898_p8 = pnand %p1897_p7, %p1891_p3 }
  0xa4   : > { %1901 = shalt.err (!%p1898_p8)
}
  0xa5   : > { %s3117_s3 = smov 8   ;;  %s3118_s17 = smov 128  }
  0xa6   : > { %s3119_s12 = scalar_lea.sflag [#allocation13], %s2435_s15  ;;  %s1475_s7 = sshll.u32 %s2426_s24, 3 }
  0xa7   : > { %1674 = dma.hbm_to_vmem [thread:$0]  (!%p2588_p5), %s2596_s26, 512, %s2599_s28, %s3119_s12, %s3118_s17, %s3118_s17, %s3117_s3  }
  0xa8   : > { %s1476_s18 = sshll.u32 %s2246_s21, 7  ;;  %s3120_s5 = sld [smem:[#allocation52_spill]] }
  0xa9   : > { %s350_s27 = scalar_lea.vmem [#allocation3], %s1475_s7  ;;  %s3121_s23 = sld [smem:[#allocation55_spill]] }
  0xaa   : > { %s358_s10 = sshll.u32 %s350_s27, 4  ;;  %s347_s28 = scalar_lea.sflag [#allocation4], %s2426_s24  ;;  %s2641_s10 = int_to_ptr.vmem [resolvable:$true] %s358_s10 }
  0xab   : > { %p3122_p12 = scmp.ne.s32.totalorder %s3090_s16, 0 }
  0xae   : > { %s2639_s22 = scalar_lea.hbm %s3120_s5, %s1476_s18  ;;  %s1907_s19 = scalar_lea.hbm %s3120_s5, 256 }
  0xaf   : > { %s2647_s4 = scalar_lea.hbm %s3121_s23, %s2582_s0  ;;  %s1902_s26 = scalar_lea.hbm %s2639_s22, 128 }
  0xb0   : > { %p1903_p2 = scmp.ne.s32.totalorder %s2639_s22, %s1902_s26  ;;  %p1908_p1 = scmp.lt.u32.totalorder %s2639_s22, %s3120_s5 }
  0xb1   : > { %p1909_p6 = scmp.lt.u32.totalorder %s1907_s19, %s1902_s26  ;;  %p1911_p9 = scmp.lt.u32.totalorder %s1902_s26, %s2639_s22 }
  0xb2   : > { %p1905_p3 = pnand %p1903_p2, %p3122_p12 }
  0xb3   : > { %p1910_p13 = por %p1909_p6, %p1908_p1 }
  0xb4   : > { %p1906_p4 = pneg %p1905_p3 }
  0xb5   : > { %p1912_p0 = por %p1911_p9, %p1910_p13 }
  0xb7   : > { %p1913_p10 = pnand %p1912_p0, %p1906_p4 }
  0xb9   : > { %1916 = shalt.err (!%p1913_p10)
}
  0xba   : > { %s1917_s13 = scalar_lea.vmem %s2641_s10, 128  ;;  %s2257_s24 = smov [#allocation3]  }
  0xbb   : > { %p1918_p7 = scmp.ne.s32.totalorder %s2641_s10, %s1917_s13  ;;  %s1922_s1 = sshll.u32 %s2257_s24, 4  ;;  %s1923_s1 = int_to_ptr.vmem [resolvable:$false] %s1922_s1 }
  0xbc   : > { %s1924_s27 = scalar_lea.vmem %s1923_s1, 256  ;;  %p1925_p3 = scmp.lt.s32.totalorder %s2641_s10, %s1923_s1 }
  0xbd   : > { %p1920_p8 = pnand %p1918_p7, %p3122_p12  ;;  %p1926_p5 = scmp.lt.s32.totalorder %s1924_s27, %s1917_s13 }
  0xbf   : > { %p1921_p2 = pneg %p1920_p8  ;;  %p1927_p1 = por %p1926_p5, %p1925_p3 }
  0xc1   : > { %p1928_p6 = pnand %p1927_p1, %p1921_p2 }
  0xc3   : > { %1931 = shalt.err (!%p1928_p6)
}
  0xc4   : > { %p3123_p4 = scmp.ne.s32.totalorder %s3088_s25, 0  ;;  %s1932_s26 = scalar_lea.hbm %s2488_s30, 256 }
  0xc5   : > { %p1933_p13 = scmp.ne.s32.totalorder %s2488_s30, %s1932_s26  ;;  %s1937_s19 = scalar_lea.hbm %s2996_s2, 512 }
  0xc6   : > { %1659 = dma.hbm_to_vmem [thread:$0]  (!%p3123_p4), %s2639_s22, 128, %s2641_s10, %s347_s28  }
  0xc7   : > { %p1935_p9 = pnand %p1933_p13, %p3122_p12  ;;  %p1938_p5 = scmp.lt.u32.totalorder %s2488_s30, %s2996_s2 }
  0xc8   : > { %p1939_p10 = scmp.lt.u32.totalorder %s1937_s19, %s1932_s26  ;;  %p1941_p8 = scmp.lt.u32.totalorder %s1932_s26, %s2488_s30 }
  0xc9   : > { %p1936_p0 = pneg %p1935_p9 }
  0xca   : > { %p1940_p7 = por %p1939_p10, %p1938_p5 }
  0xcc   : > { %p1942_p2 = por %p1941_p8, %p1940_p7 }
  0xce   : > { %p1943_p3 = pnand %p1942_p2, %p1936_p0 }
  0xd0   : > { %1946 = shalt.err (!%p1943_p3)
}
  0xd1   : > { %s1947_s10 = scalar_lea.vmem %s2493_s6, 256  ;;  %s2258_s22 = smov [#allocation8]  }
  0xd2   : > { %p1948_p1 = scmp.ne.s32.totalorder %s2493_s6, %s1947_s10  ;;  %s1952_s28 = sshll.u32 %s2258_s22, 4  ;;  %s1953_s28 = int_to_ptr.vmem [resolvable:$false] %s1952_s28 }
  0xd3   : > { %s1954_s13 = scalar_lea.vmem %s1953_s28, 512  ;;  %p1955_p9 = scmp.lt.s32.totalorder %s2493_s6, %s1953_s28 }
  0xd4   : > { %p1950_p6 = pnand %p1948_p1, %p3122_p12  ;;  %p1956_p11 = scmp.lt.s32.totalorder %s1954_s13, %s1947_s10 }
  0xd6   : > { %p1951_p13 = pneg %p1950_p6  ;;  %p1957_p5 = por %p1956_p11, %p1955_p9 }
  0xd8   : > { %p1958_p10 = pnand %p1957_p5, %p1951_p13 }
  0xda   : > { %1961 = shalt.err (!%p1958_p10)
}
  0xdb   : > { %s3124_s24 = scalar_lea.sflag [#allocation7], %s2435_s15  ;;  %s428_s16 = scalar_lea.vmem [#allocation11], %s2579_s29 }
  0xdc   : > { %1665 = dma.hbm_to_vmem [thread:$0]  (!%p3123_p4), %s2488_s30, 256, %s2493_s6, %s3124_s24, %s3118_s17, %s3118_s17, %s3117_s3  }
  0xdd   : > { %s435_s1 = sshll.u32 %s428_s16, 4  ;;  %s3125_s26 = sld [smem:[#allocation57_spill]]  ;;  %s2698_s1 = int_to_ptr.vmem [resolvable:$true] %s435_s1 }
  0xde   : > { %s1962_s18 = scalar_lea.hbm %s2647_s4, 512  ;;  %p3126_p12 = scmp.ne.s32.totalorder %s3116_s14, 0 }
  0xdf   : > { %p1963_p11 = scmp.ne.s32.totalorder %s2647_s4, %s1962_s18  ;;  %s1967_s7 = scalar_lea.hbm %s3121_s23, 2048 }
  0xe0   : > { %p1968_p4 = scmp.lt.u32.totalorder %s2647_s4, %s3121_s23  ;;  %p1969_p8 = scmp.lt.u32.totalorder %s1967_s7, %s1962_s18 }
  0xe1   : > { %p1965_p0 = pnand %p1963_p11, %p3126_p12  ;;  %p1971_p3 = scmp.lt.u32.totalorder %s1962_s18, %s2647_s4 }
  0xe2   : > { %p1970_p2 = por %p1969_p8, %p1968_p4 }
  0xe3   : > { %s2704_s12 = scalar_lea.hbm %s3125_s26, %s2582_s0  ;;  %p1966_p7 = pneg %p1965_p0 }
  0xe4   : > { %p1972_p1 = por %p1971_p3, %p1970_p2 }
  0xe6   : > { %p1973_p6 = pnand %p1972_p1, %p1966_p7 }
  0xe8   : > { %1976 = shalt.err (!%p1973_p6)
}
  0xe9   : > { %s1977_s30 = scalar_lea.vmem %s2698_s1, 512  ;;  %s2259_s0 = smov [#allocation11]  }
  0xea   : > { %p1978_p13 = scmp.ne.s32.totalorder %s2698_s1, %s1977_s30  ;;  %s1982_s22 = sshll.u32 %s2259_s0, 4  ;;  %s1983_s22 = int_to_ptr.vmem [resolvable:$false] %s1982_s22 }
  0xeb   : > { %s1984_s28 = scalar_lea.vmem %s1983_s22, 1024  ;;  %p1985_p10 = scmp.lt.s32.totalorder %s2698_s1, %s1983_s22 }
  0xec   : > { %p1980_p9 = pnand %p1978_p13, %p3126_p12  ;;  %p1986_p11 = scmp.lt.s32.totalorder %s1984_s28, %s1977_s30 }
  0xee   : > { %p1981_p5 = pneg %p1980_p9  ;;  %p1987_p0 = por %p1986_p11, %p1985_p10 }
  0xf0   : > { %p1988_p4 = pnand %p1987_p0, %p1981_p5 }
  0xf2   : > { %1991 = shalt.err (!%p1988_p4)
}
  0xf3   : > { %p3127_p7 = scmp.ne.s32.totalorder %s3114_s8, 0  ;;  %s3128_s13 = scalar_lea.sflag [#allocation10], %s2435_s15 }
  0xf4   : > { %s470_s24 = scalar_lea.vmem [#allocation14], %s2579_s29  ;;  %s1493_s25 = sshll.u32 %s2576_s9, 3 }
  0xf5   : > { %1671 = dma.hbm_to_vmem [thread:$0]  (!%p3127_p7), %s2647_s4, 512, %s2698_s1, %s3128_s13, %s3118_s17, %s3118_s17, %s3117_s3  }
  0xf6   : > { %s477_s16 = sshll.u32 %s470_s24, 4  ;;  %s1992_s27 = scalar_lea.hbm %s2704_s12, 512  ;;  %s2733_s16 = int_to_ptr.vmem [resolvable:$true] %s477_s16 }
  0xf7   : > { %p1993_p8 = scmp.ne.s32.totalorder %s2704_s12, %s1992_s27  ;;  %s1997_s11 = scalar_lea.hbm %s3125_s26, 2048 }
  0xf8   : > { %p1998_p1 = scmp.lt.u32.totalorder %s2704_s12, %s3125_s26  ;;  %p1999_p6 = scmp.lt.u32.totalorder %s1997_s11, %s1992_s27 }
  0xf9   : > { %p1995_p2 = pnand %p1993_p8, %p3126_p12  ;;  %p2001_p9 = scmp.lt.u32.totalorder %s1992_s27, %s2704_s12 }
  0xfa   : > { %p2000_p13 = por %p1999_p6, %p1998_p1 }
  0xfb   : > { %p1996_p3 = pneg %p1995_p2 }
  0xfc   : > { %p2002_p5 = por %p2001_p9, %p2000_p13 }
  0xfe   : > { %p2003_p10 = pnand %p2002_p5, %p1996_p3 }
 0x100   : > { %2006 = shalt.err (!%p2003_p10)
}
 0x101   : > { %s2007_s4 = scalar_lea.vmem %s2733_s16, 512  ;;  %s2260_s29 = smov [#allocation14]  }
 0x102   : > { %p2008_p11 = scmp.ne.s32.totalorder %s2733_s16, %s2007_s4  ;;  %s2012_s1 = sshll.u32 %s2260_s29, 4  ;;  %s2013_s1 = int_to_ptr.vmem [resolvable:$false] %s2012_s1 }
 0x103   : > { %s2014_s6 = scalar_lea.vmem %s2013_s1, 1024  ;;  %p2015_p8 = scmp.lt.s32.totalorder %s2733_s16, %s2013_s1 }
 0x104   : > { %p2010_p0 = pnand %p2008_p11, %p3126_p12  ;;  %p2016_p2 = scmp.lt.s32.totalorder %s2014_s6, %s2007_s4 }
 0x106   : > { %p2011_p4 = pneg %p2010_p0  ;;  %p2017_p1 = por %p2016_p2, %p2015_p8 }
 0x108   : > { %p2018_p6 = pnand %p2017_p1, %p2011_p4 }
 0x10a   : > { %2021 = shalt.err (!%p2018_p6)
}
 0x10b   : > { %s3129_s30 = scalar_lea.sflag [#allocation13], %s2435_s15  ;;  %s1494_s0 = sshll.u32 %s2242_s20, 7 }
 0x10c   : > { %1677 = dma.hbm_to_vmem [thread:$0]  (!%p3127_p7), %s2704_s12, 512, %s2733_s16, %s3129_s30, %s3118_s17, %s3118_s17, %s3117_s3  }
 0x10d   : > { %s3130_s13 = sld [smem:[#allocation58_spill]]  ;;  %s491_s18 = scalar_lea.vmem [#allocation15], %s1493_s25 }
 0x10e   : > { %s498_s15 = sshll.u32 %s491_s18, 4  ;;  %s488_s19 = scalar_lea.sflag [#allocation16], %s2576_s9  ;;  %s499_s15 = int_to_ptr.vmem [resolvable:$true] %s498_s15 }
 0x113   : > { %s3131_s24 = smov %s3130_s13  ;;  %s2766_s27 = scalar_lea.hbm %s3130_s13, %s1494_s0 }
 0x114   : > { %s2022_s11 = scalar_lea.hbm %s2766_s27, 128  ;;  %s2027_s12 = scalar_lea.hbm %s3131_s24, 512 }
 0x115   : > { %p2023_p3 = scmp.ne.s32.totalorder %s2766_s27, %s2022_s11  ;;  %p2028_p5 = scmp.lt.u32.totalorder %s2766_s27, %s3131_s24 }
 0x116   : > { %p2029_p10 = scmp.lt.u32.totalorder %s2027_s12, %s2022_s11  ;;  %p2031_p0 = scmp.lt.u32.totalorder %s2022_s11, %s2766_s27 }
 0x117   : > { %p2025_p13 = pnand %p2023_p3, %p3126_p12 }
 0x118   : > { %p2030_p11 = por %p2029_p10, %p2028_p5 }
 0x119   : > { %p2026_p9 = pneg %p2025_p13 }
 0x11a   : > { %p2032_p4 = por %p2031_p0, %p2030_p11 }
 0x11c   : > { %p2033_p8 = pnand %p2032_p4, %p2026_p9 }
 0x11e   : > { %2036 = shalt.err (!%p2033_p8)
}
 0x11f   : > { %s2037_s9 = scalar_lea.vmem %s499_s15, 128  ;;  %s2261_s25 = smov [#allocation15]  }
 0x120   : > { %p2038_p2 = scmp.ne.s32.totalorder %s499_s15, %s2037_s9  ;;  %s2042_s10 = sshll.u32 %s2261_s25, 4  ;;  %s2043_s10 = int_to_ptr.vmem [resolvable:$false] %s2042_s10 }
 0x121   : > { %s2044_s4 = scalar_lea.vmem %s2043_s10, 256  ;;  %p2045_p3 = scmp.lt.s32.totalorder %s499_s15, %s2043_s10 }
 0x122   : > { %p2040_p1 = pnand %p2038_p2, %p3126_p12  ;;  %p2046_p13 = scmp.lt.s32.totalorder %s2044_s4, %s2037_s9 }
 0x124   : > { %p2041_p6 = pneg %p2040_p1  ;;  %p2047_p7 = por %p2046_p13, %p2045_p3 }
 0x126   : > { %p2048_p5 = pnand %p2047_p7, %p2041_p6 }
 0x128   : > { %2051 = shalt.err (!%p2048_p5)
}
 0x129   : > { %p3132_p10 = scmp.ne.s32.totalorder %s3114_s8, 0  ;;  %s3133_s29 = sld [smem:[#allocation44_spill]] }
 0x12b   : > { %1680 = dma.hbm_to_vmem [thread:$0]  (!%p3132_p10), %s2766_s27, 128, %s499_s15, %s488_s19  }
 0x12f   : > { %p3134_p9 = scmp.ne.s32.totalorder %s3133_s29, 0 }
 0x130   : > { %s3135_s1 = sld [smem:[#allocation34_spill]] (!%p3134_p9)  ;;  %s3136_s14 = sld [smem:[#allocation40_spill]] (!%p3134_p9) }
 0x131   : > { %507 = sbr.rel (%p3134_p9) target bundleno = 1608 (0x648), region = 52 }
 0x136   : > { %s2791_s6 = sand.u32 (!%p3134_p9), 1, %s3135_s1   ;;  %p3137_p12 = scmp.ne.s32.totalorder (!%p3134_p9), %s3136_s14, 0 }
 0x137   : > { %s1496_s30 = sshll.u32 (!%p3134_p9), %s2791_s6, 3  ;;  %s510_s0 = scalar_lea.sflag (!%p3134_p9), [#allocation4], %s2791_s6 }
 0x138   : > { %s2797_s22 = scalar_lea.vmem [#allocation3], %s1496_s30 }
 0x139   : > { %2165 = dma.done.wait (%p3137_p12), %s510_s0, 128  }
 0x13a   : > { %2167 = vsyncadd (%p3137_p12), %s510_s0, 4294967168  ;;  %s3138_s8 = sld [smem:[#allocation39_spill]]  ;;  %s1497_s13 = sshll.u32 %s2791_s6, 4 }
 0x13b   : > { %s2805_s18 = scalar_lea.vmem [#allocation6], %s1497_s13 }
 0x140   : > { %s518_s28 = sand.u32 1, %s3138_s8  }
 0x141   : > { %s519_s27 = scalar_lea.sflag [#allocation7], %s518_s28 }
 0x142   : > { %2169 = dma.done.wait (%p3137_p12), %s519_s27, 512  }
 0x143   : > { %2171 = vsyncadd (%p3137_p12), %s519_s27, 4294966784  ;;  %s2811_s15 = scalar_lea.vmem [#allocation8], %s1497_s13  ;;  %s537_s19 = scalar_lea.sflag [#allocation10], %s518_s28 }
 0x144   : > { %s539_s11 = scalar_lea.vmem [#allocation9], %s2791_s6 }
 0x145   : > { %2173 = dma.done.wait (%p3137_p12), %s537_s19, 16  }
 0x146   : > { %2175 = vsyncadd (%p3137_p12), %s537_s19, 4294967280  ;;  %s3139_s3 = sld [smem:[#allocation31_spill]]  ;;  %s3140_s17 = sld [smem:[#allocation48_spill]] }
 0x14c   : > { %s546_s12 = sand.u32 1, %s3139_s3   ;;  %p3141_p7 = scmp.ne.s32.totalorder %s3140_s17, 0 }
 0x14d   : > { %s1499_s16 = sshll.u32 %s546_s12, 5 }
 0x14e   : > { %s2819_s7 = scalar_lea.vmem [#allocation11], %s1499_s16 }
 0x14f   : > { %2177 = dma.done.wait (%p3141_p7), %s537_s19, 512  }
 0x150   : > { %2179 = vsyncadd (%p3141_p7), %s537_s19, 4294966784  ;;  %s554_s9 = scalar_lea.sflag [#allocation13], %s518_s28  ;;  %s557_s25 = scalar_lea.vmem [#allocation12], %s1499_s16 }
 0x151   : > { %2181 = dma.done.wait (%p3141_p7), %s554_s9, 1024  }
 0x152   : > { %2183 = vsyncadd (%p3141_p7), %s554_s9, 4294966272  ;;  %s1502_s10 = sshll.u32 %s546_s12, 3  ;;  %s2829_s4 = scalar_lea.vmem [#allocation14], %s1499_s16 }
 0x153   : > { %s572_s29 = scalar_lea.sflag [#allocation16], %s546_s12  ;;  %s2831_s1 = scalar_lea.vmem [#allocation15], %s1502_s10 }
 0x154   : > { %2185 = dma.done.wait (%p3141_p7), %s572_s29, 128  }
 0x155   : > { %2187 = vsyncadd (%p3141_p7), %s572_s29, 4294967168  ;;  %s3142_s14 = sld [smem:[#allocation29_spill]]  ;;  %s2844_s28 = scalar_lea.vmem [#allocation17], %s1496_s30 }
 0x156   : > { %s3143_s27 = sld [smem:[#allocation36_spill]] }
 0x15b   : > { %s646_s0 = sand.u32 1, %s3142_s14  }
 0x15c   : > { %s2840_s8 = sshll.u32 %s646_s0, 3  ;;  %p1505_p11 = scmp.ne.s32.totalorder %s3143_s27, 0 }
 0x15d   : > { %s648_s13 = scalar_lea.vmem [#allocation18], %s2840_s8  ;;  %vm653_vm0 = vcmask (!%p1505_p11), 261120   ;;  %v2262_v0 = vmov (!%p1505_p11), 0.0  }
 0x15e   : > { %652 = sbr.rel (%p1505_p11) target bundleno = 357 (0x165), region = 88  ;;  %654 = vst.msk [vmem:[#allocation2] sm:$0xff] (!%p1505_p11), %vm653_vm0, %v2262_v0 }
 0x165 PF: > { %v738_v1 = vld [vmem:[%s557_s25] sm:$0xff]  ;;  %v739_v2 = vld [vmem:[%s557_s25 + $0x8] sm:$0xff]  ;;  %v740_v3 = vld [vmem:[%s557_s25 + $0x10] sm:$0xff]  ;;  %vm664_vm1 = vcmask 261120   ;;  %v2263_v6 = vmov 0.0|0.0   ;;  %vm2264_vm2 = vmmov 0  }
 0x166   : > { %v1613_v4 = vpack.c.bf16 %v739_v2, %v738_v1  ;;  %v741_v5 = vld [vmem:[%s557_s25 + $0x18] sm:$0xff]  ;;  %1607 = vmatprep.subr.bf16.mxu0 %v2263_v6  ;;  %v660_v8 = vld [vmem:[%s2819_s7] sm:$0xff]  ;;  %v661_v10 = vld [vmem:[%s2819_s7 + $0x8] sm:$0xff]  ;;  %v2265_v12 = vmov 0.0   ;;  %vm916_vm3 = vcmask 64512   ;;  %vm996_vm5 = vcmask 130048  }
 0x167   : > { %v656_v7 = vld [vmem:[%s2805_s18] sm:$0xff]  ;;  %v1617_v9 = vpack.c.bf16 %v741_v5, %v740_v3  ;;  %1563 = vmatprep.mubr.msk.f32.mxu0 %vm2264_vm2, %v2265_v12  ;;  %v1608_v13 = vpack.c.bf16 %v661_v10, %v660_v8  ;;  %v657_v16 = vld [vmem:[%s2805_s18 + $0x8] sm:$0xff]  ;;  %vm1631_vm4 = vmpackc.low %vm916_vm3, %vm916_vm3  ;;  %s3144_s30 = sld [smem:[#allocation36_spill]] }
 0x168   : > { %1574 = vmatprep.mubr.msk.f32.mxu1 %vm664_vm1, %v656_v7  ;;  %v662_v11 = vld [vmem:[%s2819_s7 + $0x10] sm:$0xff]  ;;  %1614 = vmatprep.subr.bf16.mxu1 %v1613_v4  ;;  %v663_v14 = vld [vmem:[%s2819_s7 + $0x18] sm:$0xff]  ;;  %v823_v24 = vld [vmem:[%s2829_s4] sm:$0xff] }
 0x169   : > { %1616 = vmatpush3.bf16.msra.mxu1 %v1613_v4  ;;  %1609 = vmatpush3.bf16.msra.mxu0 %v1608_v13  ;;  %v1611_v15 = vpack.c.bf16 %v663_v14, %v662_v11  ;;  %v655_v17 = vld [vmem:[%s2797_s22] sm:$0xff]  ;;  %v658_v29 = vld [vmem:[%s2811_s15] sm:$0xff]  ;;  %v1511_v32 = vld [vmem:[%s539_s11] ss:$0 sm:$0xff] }
 0x16a   : > { %1618 = vmatprep.subr.bf16.mxu1 %v1617_v9  ;;  %1610 = vmatprep.subr.bf16.mxu0 %v2263_v6  ;;  %v824_v25 = vld [vmem:[%s2829_s4 + $0x8] sm:$0xff]  ;;  %v825_v26 = vld [vmem:[%s2829_s4 + $0x10] sm:$0xff]  ;;  %v826_v28 = vld [vmem:[%s2829_s4 + $0x18] sm:$0xff] }
 0x16b   : > { %v1621_v27 = vpack.c.bf16 %v824_v25, %v823_v24  ;;  %v1625_v30 = vpack.c.bf16 %v826_v28, %v825_v26  ;;  %v659_v31 = vld [vmem:[%s2811_s15 + $0x8] sm:$0xff] }
 0x16c   : > { %v1083_v45 = vld [vmem:[%s2831_s1] sm:$0xff] }
 0x16d   : > { %1620 = vmatpush3.bf16.msra.mxu1 %v1617_v9  ;;  %1612 = vmatpush3.bf16.msra.mxu0 %v1611_v15  ;;  %v1082_v51 = vld [vmem:[#allocation2] sm:$0xff]  ;;  %p1517_p0 = scmp.ne.s32.totalorder %s3144_s30, 3 }
 0x16e   : > { %1629 = vmatprep.subr.bf16.mxu1 %v2263_v6  ;;  %1622 = vmatprep.subr.bf16.mxu0 %v1621_v27 }
 0x170   : > { %1575 = vmatmul.mubr.msk.f32.vlgmr.msra.gmra.mrb[0].mxu1 %vm664_vm1, %v657_v16  ;;  %1564 = vmatmul.mubr.msk.f32.vlgmr.msra.gmra.mrb[0].mxu0 %vm664_vm1, %v655_v17 }
 0x171   : > { %1592 = vmatprep.mubr.msk.f32.mxu1 %vm2264_vm2, %v2265_v12  ;;  %1585 = vmatprep.mubr.msk.f32.mxu0 %vm664_vm1, %v658_v29 }
 0x172   : > { %1624 = vmatpush3.bf16.msra.mxu0 %v1621_v27 }
 0x173   : > { %1626 = vmatprep.subr.bf16.mxu0 %v1625_v30 }
 0x176   : > { %1628 = vmatpush3.bf16.msra.mxu0 %v1625_v30 }
 0x177   : > { %1633 = vmatprep.subr.bf16.mxu0 %v2263_v6 }
 0x179   : > { %1586 = vmatmul.mubr.msk.f32.vlgmr.msra.gmra.mrb[2].mxu0 %vm664_vm1, %v659_v31 }
 0x17a   : > { %1599 = vmatprep.mubr.msk.f32.mxu0 %vm2264_vm2, %v2265_v12 }
 0x243   : > { %v1576_v18 = vpop.f32.mrb[0].mxu1  ;;  %v734_v20 = vpop.f32.mrb[0].mxu0 }
 0x244   : > { %v814_v19 = vpop.f32.mrb[1].mxu1  ;;  %v1565_v22 = vpop.f32.mrb[1].mxu0  ;;  %v908_v23 = vmul.f32 0.35355338, %v734_v20 }
 0x245   : > { %v1630_v21 = vpack.c.bf16 %v1576_v18, %v814_v19 }
 0x247   : > { %1632 = vmatpush3.bf16.xpose.msk.msra.mxu1 %vm1631_vm4, %v1630_v21 }
 0x248   : > { %1602 = vmatprep.subr.mxu1 %v2265_v12 }
 0x24c   : > { %v1587_v42 = vpop.f32.mrb[2].mxu0 }
 0x24d   : > { %v899_v43 = vpop.f32.mrb[3].mxu0 }
 0x24e   : > { %1593 = vmatmul.mubr.msk.f32.vlgmr.msra.gmra.mrb[2].mxu1 %vm916_vm3, %v908_v23  ;;  %v1634_v44 = vpack.c.bf16 %v1587_v42, %v899_v43 }
 0x24f   : > { %1604 = vmatprep.mubr.msk.f32.mxu1 %vm2264_vm2, %v2265_v12  ;;  %1603 = vmatpush3.msra.mxu1 %v1083_v45 }
 0x250   : > { %1635 = vmatpush3.bf16.msra.mxu0 %v1634_v44 }
 0x321   : > { %v992_v33 = vpop.f32.mrb[2].mxu1 }
 0x322   : > { %v993_v34 = vadd.f32 %v1511_v32, %v992_v33  ;;  %v1594_v35 = vpop.f32.mrb[3].mxu1 }
 0x324   : > { %v997_v36 = vsel %vm996_vm5, %v993_v34, -inf }
 0x325   : > { %998 = vmax.xlane.f32.xlu0 %v997_v36 }
 0x3b2   : > { %v999_v37 = vpop.xlane.xlu0 %998 }
 0x3b3   : > { %v1000_v38 = vsub.f32 %v993_v34, %v999_v37 }
 0x3b5   : > { %v1001_v39 = vmul.f32 1.442695, %v1000_v38 }
 0x3b7   : > { %1808 = vpow2.f32 %v1001_v39 }
 0x3c1   : > { %v1809_v40 = vpop.eup %1808 }
 0x3c2   : > { %v1003_v41 = vsel %vm996_vm5, %v1809_v40, 0.0 }
 0x3c3   : > { %1004 = vadd.xlane.f32.xlu0 %v1003_v41 }
 0x450   : > { %v1005_v46 = vpop.xlane.xlu0 %1004 }
 0x451   : > { %1810 = vrcp.f32 %v1005_v46 }
 0x45b   : > { %v1811_v47 = vpop.eup %1810 }
 0x45c   : > { %v1007_v48 = vmul.f32 %v1811_v47, %v1809_v40 }
 0x45e   : > { %1008 = vst.msk [vmem:[%s648_s13] sm:$0xff] %vm996_vm5, %v1007_v48  ;;  %1600 = vmatmul.mubr.msk.f32.vlgmr.msra.gmra.mrb[4].mxu0 %vm996_vm5, %v1007_v48 }
 0x531   : > { %v1078_v49 = vpop.f32.mrb[4].mxu0 }
 0x532   : > { %v1601_v50 = vpop.f32.mrb[5].mxu0  ;;  %1605 = vmatmul.mubr.msk.f32.vlgmr.msra.gmra.mrb[4].mxu1 %vm916_vm3, %v1078_v49 }
 0x602   : > { %1162 = sbr.rel (%p1517_p0) target bundleno = 1553 (0x611), region = 92 }
 0x605   : > { %v1153_v52 = vpop.f32.mrb[4].mxu1 }
 0x606   : > { %v1157_v53 = vadd.f32 %v1153_v52, %v1082_v51  ;;  %v1606_v54 = vpop.f32.mrb[5].mxu1 }
 0x608   : > { %1158 = vst.msk [vmem:[#allocation2] sm:$0xff] %vm664_vm1, %v1157_v53 }
 0x60f   : > { %v1163_v55 = vld [vmem:[#allocation2] sm:$0xff] }
 0x610   : > { %1164 = vst.msk [vmem:[%s2844_s28] sm:$0xff] %vm664_vm1, %v1163_v55 }
 0x611 PF: > { %s3145_s22 = sld [smem:[#allocation37_spill]]  ;;  %s3146_s18 = sld [smem:[#allocation41_spill]] }
 0x612   : > { %s3147_s3 = sld [smem:[#allocation59_spill]]  ;;  %s1185_s12 = sshll.u32 %s2844_s28, 4  ;;  %s1186_s12 = int_to_ptr.vmem [resolvable:$true] %s1185_s12 }
 0x613   : > { %s1166_s16 = scalar_lea.sflag [#allocation5], %s2791_s6  ;;  %s2052_s7 = scalar_lea.vmem %s1186_s12, 128 }
 0x614   : > { %p2053_p4 = scmp.ne.s32.totalorder %s1186_s12, %s2052_s7  ;;  %s2266_s9 = smov [#allocation17]  }
 0x615   : > { %s2056_s25 = sshll.u32 %s2266_s9, 4  ;;  %s2057_s25 = int_to_ptr.vmem [resolvable:$false] %s2056_s25 }
 0x616   : > { %s2058_s10 = scalar_lea.vmem %s2057_s25, 256  ;;  %p2059_p6 = scmp.lt.s32.totalorder %s1186_s12, %s2057_s25 }
 0x617   : > { %s1520_s15 = sshll.u32 %s3145_s22, 7  ;;  %p3148_p8 = scmp.ne.s32.totalorder %s3146_s18, 0 }
 0x618   : > { %s2891_s17 = scalar_lea.hbm %s3147_s3, %s1520_s15  ;;  %p2060_p3 = scmp.lt.s32.totalorder %s2058_s10, %s2052_s7 }
 0x619   : > { %p2054_p2 = pnand %p2053_p4, %p3148_p8 }
 0x61a   : > { %p2061_p13 = por %p2060_p3, %p2059_p6 }
 0x61b   : > { %p2055_p1 = pneg %p2054_p2 }
 0x61d   : > { %p2062_p5 = pnand %p2061_p13, %p2055_p1 }
 0x61f   : > { %2065 = shalt.err (!%p2062_p5)
}
 0x620   : > { %s2066_s6 = scalar_lea.hbm %s2891_s17, 128  ;;  %s2070_s1 = scalar_lea.hbm %s3147_s3, 256 }
 0x621   : > { %p2067_p10 = scmp.ne.s32.totalorder %s2891_s17, %s2066_s6  ;;  %p2071_p7 = scmp.lt.u32.totalorder %s2891_s17, %s3147_s3 }
 0x622   : > { %p2072_p11 = scmp.lt.u32.totalorder %s2070_s1, %s2066_s6  ;;  %p2074_p4 = scmp.lt.u32.totalorder %s2066_s6, %s2891_s17 }
 0x623   : > { %p2068_p9 = pnand %p2067_p10, %p3148_p8 }
 0x624   : > { %p2073_p0 = por %p2072_p11, %p2071_p7 }
 0x625   : > { %p2069_p12 = pneg %p2068_p9 }
 0x626   : > { %p2075_p2 = por %p2074_p4, %p2073_p0 }
 0x628   : > { %p2076_p1 = pnand %p2075_p2, %p2069_p12 }
 0x62a   : > { %2079 = shalt.err (!%p2076_p1)
}
 0x62b   : > { %s3149_s27 = sld [smem:[#allocation36_spill]]  ;;  %s3151_s15 = sld [smem:[#allocation51_spill]] }
 0x62c   : > { %1652 = dma.vmem_to_hbm [thread:$0]  (%p3148_p8), %s1186_s12, 128, %s2891_s17, %s1166_s16  }
 0x62d   : > { %s1521_s19 = sshll.u32 %s3145_s22, 2  ;;  %s1201_s11 = sshll.u32 %s648_s13, 4  ;;  %s2916_s11 = int_to_ptr.vmem [resolvable:$true] %s1201_s11 }
 0x62e   : > { %s3152_s18 = sld [smem:[#allocation60_spill]]  ;;  %s1171_s29 = scalar_lea.sflag [#allocation19], %s646_s0 }
 0x62f   : > { %s2080_s1 = scalar_lea.vmem %s2916_s11, 128  ;;  %s2267_s8 = smov [#allocation18]  }
 0x630   : > { %p2081_p6 = scmp.ne.s32.totalorder %s2916_s11, %s2080_s1  ;;  %s2084_s13 = sshll.u32 %s2267_s8, 4  ;;  %s2085_s13 = int_to_ptr.vmem [resolvable:$false] %s2084_s13 }
 0x631   : > { %s1197_s7 = sadd.s32 %s3149_s27, %s1521_s19  ;;  %p3154_p3 = scmp.ne.s32.totalorder %s3151_s15, 0 }
 0x632   : > { %s1522_s9 = sshll.u32 %s1197_s7, 7  ;;  %s2086_s22 = scalar_lea.vmem %s2085_s13, 256 }
 0x633   : > { %p2082_p8 = pnand %p2081_p6, %p3154_p3  ;;  %p2087_p5 = scmp.lt.s32.totalorder %s2916_s11, %s2085_s13 }
 0x634   : > { %s3153_s6 = smov %s3152_s18  ;;  %s1199_s4 = scalar_lea.hbm %s3152_s18, %s1522_s9 }
 0x635   : > { %p2083_p13 = pneg %p2082_p8  ;;  %p2088_p10 = scmp.lt.s32.totalorder %s2086_s22, %s2080_s1 }
 0x637   : > { %p2089_p9 = por %p2088_p10, %p2087_p5 }
 0x639   : > { %p2090_p12 = pnand %p2089_p9, %p2083_p13 }
 0x63b   : > { %2093 = shalt.err (!%p2090_p12)
}
 0x63c   : > { %s2094_s17 = scalar_lea.hbm %s1199_s4, 128  ;;  %s2098_s16 = scalar_lea.hbm %s3153_s6, 1024 }
 0x63d   : > { %p2095_p7 = scmp.ne.s32.totalorder %s1199_s4, %s2094_s17  ;;  %p2099_p4 = scmp.lt.u32.totalorder %s1199_s4, %s3153_s6 }
 0x63e   : > { %p2100_p2 = scmp.lt.u32.totalorder %s2098_s16, %s2094_s17  ;;  %p2102_p6 = scmp.lt.u32.totalorder %s2094_s17, %s1199_s4 }
 0x63f   : > { %p2096_p11 = pnand %p2095_p7, %p3154_p3 }
 0x640   : > { %p2101_p1 = por %p2100_p2, %p2099_p4 }
 0x641   : > { %p2097_p0 = pneg %p2096_p11 }
 0x642   : > { %p2103_p8 = por %p2102_p6, %p2101_p1 }
 0x644   : > { %p2104_p13 = pnand %p2103_p8, %p2097_p0 }
 0x646   : > { %2107 = shalt.err (!%p2104_p13)
}
 0x647   : > { %1653 = dma.vmem_to_hbm [thread:$0]  (%p3154_p3), %s2916_s11, 128, %s1199_s4, %s1171_s29  }
 0x648 PF: > { %s3155_s27 = sld [smem:[#allocation38_spill]]  ;;  %s3156_s30 = sld [smem:[#allocation33_spill]] }
 0x649   : > { %s3157_s19 = sld [smem:[#allocation42_spill]] }
 0x64e   : > { %p1689_p5 = scmp.ge.s32.totalorder %s3155_s27, 2  ;;  %s1213_s7 = sand.u32 1, %s3156_s30  }
 0x64f   : > { %p3158_p10 = scmp.ne.s32.totalorder %s3157_s19, 0  ;;  %s1214_s9 = scalar_lea.sflag [#allocation5], %s1213_s7 }
 0x651   : > { %p1682_p9 = pnand %p1689_p5, %p3158_p10 }
 0x653   : > { %2189 = dma.done.wait (!%p1682_p9), %s1214_s9, 128  }
 0x654   : > { %2191 = vsyncadd (!%p1682_p9), %s1214_s9, 4294967168  ;;  %s3159_s25 = sld [smem:[#allocation28_spill]]  ;;  %s3160_s10 = sld [smem:[#allocation43_spill]] }
 0x65a   : > { %s1222_s18 = sand.u32 1, %s3159_s25   ;;  %p3161_p12 = scmp.ne.s32.totalorder %s3160_s10, 0 }
 0x65b   : > { %s1223_s1 = scalar_lea.sflag [#allocation19], %s1222_s18 }
 0x65c   : > { %p1685_p7 = pnand %p1689_p5, %p3161_p12 }
 0x65e   : > { %2193 = dma.done.wait (!%p1685_p7), %s1223_s1, 128  }
 0x65f   : > { %2195 = vsyncadd (!%p1685_p7), %s1223_s1, 4294967168  ;;  %s41_s22 = sadd.s32 1, %s3155_s27   ;;  %s3163_s30 = sld [smem:[#allocation29_spill]] }
 0x660   : > { %p2947_p3 = scmp.ge.s32.totalorder %s41_s22, 10   ;;  %s3164_s10 = sld [smem:[#allocation30_spill]] }
 0x661   : > { %s3165_s11 = sld [smem:[#allocation50_spill]]  ;;  %s3167_s13 = sld [smem:[#allocation32_spill]] }
 0x662   : > { %s3166_s12 = sld [smem:[#allocation31_spill]]  ;;  %s3168_s14 = sld [smem:[#allocation47_spill]] }
 0x663   : > { %s3169_s4 = sld [smem:[#allocation34_spill]]  ;;  %s3170_s16 = sld [smem:[#allocation35_spill]] }
 0x664   : > { %s3171_s17 = sld [smem:[#allocation49_spill]]  ;;  %s3172_s29 = sld [smem:[#allocation45_spill]] }
 0x665   : > { %s3173_s8 = sld [smem:[#allocation46_spill]]  ;;  %s3176_s18 = smov %s2242_s20 }
 0x666   : > { %s3177_s19 = smov %s2246_s21  ;;  %40 = sbr.rel (!%p2947_p3) target bundleno = 30 (0x1e), region = 207 }
 0x669   : > { %s3175_s15 = smov %s3169_s4 }
 0x66a   : > { %s3178_s20 = smov %s3172_s29 }
 0x66b   : > { %s3179_s21 = smov %s3173_s8 }
 0x66d   :  { %1228 = vsyncpa [#allocation4], 1 }
 0x66e   :  { %1230 = vsyncpa [#allocation4 + $0x1], 1 }
 0x66f   :  { %1231 = vsyncpa [#allocation7], 1 }
 0x670   :  { %1233 = vsyncpa [#allocation7 + $0x1], 1 }
 0x671   :  { %1234 = vsyncpa [#allocation10], 1 }
 0x672   :  { %1236 = vsyncpa [#allocation10 + $0x1], 1 }
 0x673   :  { %1237 = vsyncpa [#allocation13], 1 }
 0x674   :  { %1239 = vsyncpa [#allocation13 + $0x1], 1 }
 0x675   :  { %1240 = vsyncpa [#allocation16], 1 }
 0x676   :  { %1242 = vsyncpa [#allocation16 + $0x1], 1 }
 0x677   :  { %1243 = vsyncpa [#allocation5], 1 }
 0x678   :  { %1245 = vsyncpa [#allocation5 + $0x1], 1 }
 0x679   :  { %1246 = vsyncpa [#allocation19], 1 }
 0x67a   :  { %1248 = vsyncpa [#allocation19 + $0x1], 1 }

</bundles_post_ra>
